<compile_context>
chip_gen: v5e
topology: v5e:2x2
jax: 0.10.0
libtpu: 0.0.40
codegen_flags: <defaults>
</compile_context>

<pallas_src>
from functools import partial

import jax
import jax.numpy as jnp
from jax.experimental import pallas as pl
from jax.experimental.pallas import tpu as pltpu


# ----------------------------------------------------------------------------
# Kernel
# ----------------------------------------------------------------------------
def residual_block_kernel(x_ref, w1_ref, w2_ref, out_ref, xpad_ref, hpad_ref):
    # x_ref   : (tN, H, W*C)      input row slabs (NHWC with W,C merged: lanes)
    # w1_ref  : (3*W*C, W*C)      banded im2col weight for conv1 (MXU dtype)
    # w2_ref  : (3*W*C, W*C)      banded im2col weight for conv2 (MXU dtype)
    # out_ref : (tN, H, W*C)
    # xpad_ref, hpad_ref : (tN, H+2, W*C) MXU-dtype VMEM scratch (H-padded)
    tN, H, WC = x_ref.shape
    mxu_dtype = xpad_ref.dtype

    x = x_ref[...].astype(jnp.float32)                   # f32 residual copy
    zrow = jnp.zeros((tN, 1, WC), mxu_dtype)

    # H-pad x into scratch (cast only at the matmul boundary): zero ONLY the
    # two border rows; the interior is fully overwritten.  W-axis zero padding
    # is folded into the banded weight, so no W padding is materialized.
    xpad_ref[:, 0:1, :] = zrow
    xpad_ref[:, H + 1:H + 2, :] = zrow
    xpad_ref[:, 1:H + 1, :] = x.astype(mxu_dtype)

    def conv(pad_ref, w_ref):
        # Three accumulated per-dy dots (no lane-axis concatenate): LHS for
        # tap dy is the row-shifted window pad_ref[:, dy:dy+H, :], RHS is the
        # matching (W*C, W*C) band of the im2col weight.  f32 accumulation.
        acc = jnp.zeros((tN * H, WC), jnp.float32)
        for dy in range(3):
            lhs = pad_ref[:, dy:dy + H, :].reshape(tN * H, WC)
            acc += jnp.dot(lhs, w_ref[dy * WC:(dy + 1) * WC, :],
                           preferred_element_type=jnp.float32)
        return acc.reshape(tN, H, WC)

    # conv1 + ReLU (ReLU in f32 on the VPU).
    h = jnp.maximum(conv(xpad_ref, w1_ref), 0.0)

    # H-pad the hidden activation for conv2 (same border-only zeroing).
    hpad_ref[:, 0:1, :] = zrow
    hpad_ref[:, H + 1:H + 2, :] = zrow
    hpad_ref[:, 1:H + 1, :] = h.astype(mxu_dtype)

    # conv2 + fused residual add (f32).
    out_ref[...] = (x + conv(hpad_ref, w2_ref)).astype(out_ref.dtype)


# ----------------------------------------------------------------------------
# Weight preprocessing (plain JAX, outside the kernel)
# ----------------------------------------------------------------------------
def conv3x3_band_weight(w_oihw, W):
    """OIHW (Cout, Cin, 3, 3) -> banded im2col matrix (3*W*Cin, W*Cout).

    Row index = dy*(W*Cin) + wi*Cin + ci, col index = wo*Cout + co, with
    B[...] = w[co, ci, dy, dx] iff wi == wo + dx - 1 (W-axis zero padding is
    implicit: out-of-range taps simply have no entry)."""
    w_hwio = jnp.transpose(w_oihw, (2, 3, 1, 0))          # (3, 3, Cin, Cout)
    kh, kw, cin, cout = w_hwio.shape
    blocks = []
    for dy in range(kh):
        b = jnp.zeros((W, cin, W, cout), w_hwio.dtype)
        for dx in range(kw):
            # shift[wi, wo] = 1  iff  wi == wo + dx - 1
            shift = jnp.eye(W, W, k=1 - dx, dtype=w_hwio.dtype)
            b = b + jnp.einsum('ab,ij->aibj', shift, w_hwio[dy, dx])
        blocks.append(b.reshape(W * cin, W * cout))
    return jnp.concatenate(blocks, axis=0)                # (3*W*Cin, W*Cout)


def _l2normalize(v, eps=1e-12):
    return v / (jnp.linalg.norm(v) + eps)


def spectral_normalize(w_oihw, key, power_iterations=1):
    """One power iteration of spectral norm: w_bar = w / sigma.
    TODO(synk): PyTorch's SpectralNorm persists the power-iteration vector u
    across forward passes (module buffer); here u is drawn fresh — wrapper
    fidelity only, the Pallas kernel consumes the normalized weight."""
    o = w_oihw.shape[0]
    wm = w_oihw.reshape(o, -1)
    u = _l2normalize(jax.random.normal(key, (o,), jnp.float32))
    v = None
    for _ in range(power_iterations):
        v = _l2normalize(wm.T @ u)
        u = _l2normalize(wm @ v)
    sigma = u @ (wm @ v)
    return w_oihw / sigma


# ----------------------------------------------------------------------------
# Wrapper
# ----------------------------------------------------------------------------
def _pick_batch_tile(N, H):
    """Batch elements per grid step: target M = tN*H >= 256 MXU rows, but keep
    at least 2 grid steps when N > 1 so v7x's second TensorCore gets work and
    input/output DMA pipelines against compute."""
    tn = max(1, min(N, 256 // max(H, 1)))
    while tn > 1 and (N % tn != 0 or N // tn < 2):
        tn -= 1
    return tn


@partial(jax.jit, static_argnames=("mxu_dtype",))
def residual_block_forward(x_nchw, w1_sn_oihw, w2_sn_oihw, *,
                           mxu_dtype=jnp.bfloat16):
    """x_nchw: (N, C, H, W) float32; weights (C, C, 3, 3) already spectrally
    normalized.  Returns (N, C, H, W)."""
    N, C, H, W = x_nchw.shape
    WC = W * C
    tN = _pick_batch_tile(N, H)
    n_tiles = N // tN

    # NCHW -> (N, H, W*C) row slabs (channels fastest; matches band matrix).
    x_rows = jnp.transpose(x_nchw, (0, 2, 3, 1)).reshape(N, H, WC)

    b1 = conv3x3_band_weight(w1_sn_oihw, W).astype(mxu_dtype)   # (3*WC, WC)
    b2 = conv3x3_band_weight(w2_sn_oihw, W).astype(mxu_dtype)   # (3*WC, WC)

    # VMEM budget, sized against v7x's 64 MiB/TC: double-buffered in/out
    # blocks + (conservatively) double-buffered weights + 2 padded scratches.
    x_isz = jnp.dtype(x_nchw.dtype).itemsize
    m_isz = jnp.dtype(mxu_dtype).itemsize
    block_bytes = tN * H * WC * x_isz
    w_bytes = 3 * WC * WC * m_isz
    scratch_bytes = tN * (H + 2) * WC * m_isz
    vmem_needed = 2 * 2 * block_bytes + 2 * 2 * w_bytes + 2 * scratch_bytes
    assert vmem_needed <= 48 * 1024 * 1024, (
        f"block sizing exceeds v7x VMEM budget: {vmem_needed} bytes")
    vmem_limit = int(min(64 * 1024 * 1024, max(2 * vmem_needed, 32 * 1024 * 1024)))

    out_rows = pl.pallas_call(
        residual_block_kernel,
        out_shape=jax.ShapeDtypeStruct((N, H, WC), x_nchw.dtype),
        grid_spec=pltpu.PrefetchScalarGridSpec(
            num_scalar_prefetch=0,
            grid=(n_tiles,),                              # batch tiles
            in_specs=[
                pl.BlockSpec((tN, H, WC), lambda i: (i, 0, 0)),
                pl.BlockSpec((3 * WC, WC), lambda i: (0, 0)),
                pl.BlockSpec((3 * WC, WC), lambda i: (0, 0)),
            ],
            out_specs=pl.BlockSpec((tN, H, WC), lambda i: (i, 0, 0)),
            scratch_shapes=[
                pltpu.VMEM((tN, H + 2, WC), mxu_dtype),   # H-padded x
                pltpu.VMEM((tN, H + 2, WC), mxu_dtype),   # H-padded relu(conv1)
            ],
        ),
        compiler_params=pltpu.CompilerParams(
            dimension_semantics=("parallel",),            # megacore-friendly
            vmem_limit_bytes=vmem_limit),
    )(x_rows, b1, b2)

    # (N, H, W*C) -> NCHW (match PyTorch output layout)
    return jnp.transpose(out_rows.reshape(N, H, W, C), (0, 3, 1, 2))


# ----------------------------------------------------------------------------
# Pure-JAX reference (correctness check)
# ----------------------------------------------------------------------------
def residual_block_reference(x_nchw, w1_oihw, w2_oihw):
    dn = ('NCHW', 'OIHW', 'NCHW')

    def conv(x, w):
        return jax.lax.conv_general_dilated(
            x, w, window_strides=(1, 1), padding=((1, 1), (1, 1)),
            dimension_numbers=dn, precision=jax.lax.Precision.HIGHEST)

    h = jax.nn.relu(conv(x_nchw, w1_oihw))
    return x_nchw + conv(h, w2_oihw)


if __name__ == "__main__":
    # Small shapes implied by the module: residual add requires dim_in == dim_out.
    N, C, H, W = 2, 4, 16, 16

    key = jax.random.PRNGKey(0)
    k_x, k_w1, k_w2, k_u1, k_u2 = jax.random.split(key, 5)

    x = jax.random.normal(k_x, (N, C, H, W), jnp.float32)

    # Deterministic conv weights, shape (dim_out, dim_in, 3, 3) as in nn.Conv2d.
    w1 = 0.1 * jax.random.normal(k_w1, (C, C, 3, 3), jnp.float32)
    w2 = 0.1 * jax.random.normal(k_w2, (C, C, 3, 3), jnp.float32)

    # SpectralNorm: weight preprocessing (one power iteration), plain-JAX glue.
    w1_sn = spectral_normalize(w1, k_u1)
    w2_sn = spectral_normalize(w2, k_u2)

    ref = residual_block_reference(x, w1_sn, w2_sn)

    # 1) Strict structural check: f32 MXU operands, tight tolerance.
    out_f32 = residual_block_forward(x, w1_sn, w2_sn, mxu_dtype=jnp.float32)
    jax.block_until_ready(out_f32)
    assert out_f32.shape == (N, C, H, W), out_f32.shape
    err_f32 = float(jnp.max(jnp.abs(out_f32 - ref)))
    assert err_f32 < 2e-4, f"f32 path max abs error vs reference: {err_f32}"

    # 2) Performance config: bf16 MXU operands (native on v5e/v6e/v7x), f32
    #    accumulation; tolerance deliberately loosened for bf16 operand rounding.
    out = residual_block_forward(x, w1_sn, w2_sn, mxu_dtype=jnp.bfloat16)
    jax.block_until_ready(out)
    assert out.shape == (N, C, H, W), out.shape
    err_bf16 = float(jnp.max(jnp.abs(out - ref)))
    assert err_bf16 < 7.5e-2, f"bf16 path max abs error vs reference: {err_bf16}"

    print("KERNEL_OK")
</pallas_src>

<mosaic_0001>
module attributes {stable_mosaic.version = 11 : i64} {
  func.func @residual_block_kernel(%arg0: i32, %arg1: memref<1x16x64xf32, #tpu.memory_space<vmem>>, %arg2: memref<192x64xf32, #tpu.memory_space<vmem>>, %arg3: memref<192x64xf32, #tpu.memory_space<vmem>>, %arg4: memref<1x16x64xf32, #tpu.memory_space<vmem>>, %arg5: memref<1x18x64xf32, #tpu.memory_space<vmem>>, %arg6: memref<1x18x64xf32, #tpu.memory_space<vmem>>) attributes {dimension_semantics = [#tpu.dimension_semantics<parallel>], iteration_bounds = array<i64: 2>, scalar_prefetch = 0 : i64, scratch_operands = 2 : i64, tpu.core_type = #tpu.core_type<tc>, window_params = [{transform_indices = @transform_0, window_bounds = array<i64: 1, 16, 64>}, {pipeline_mode = #tpu.pipeline_mode<synchronous>, transform_indices = @transform_1, window_bounds = array<i64: 192, 64>}, {pipeline_mode = #tpu.pipeline_mode<synchronous>, transform_indices = @transform_2, window_bounds = array<i64: 192, 64>}, {transform_indices = @transform_3, window_bounds = array<i64: 1, 16, 64>}]} {
    %c0 = arith.constant 0 : index
    %c0_0 = arith.constant 0 : index
    %c0_1 = arith.constant 0 : index
    %0 = vector.load %arg1[%c0, %c0_0, %c0_1] : memref<1x16x64xf32, #tpu.memory_space<vmem>>, vector<1x16x64xf32>
    %cst = arith.constant 0.000000e+00 : f32
    %1 = vector.broadcast %cst : f32 to vector<1x1x64xf32>
    %c0_2 = arith.constant 0 : index
    %c0_3 = arith.constant 0 : index
    %c0_4 = arith.constant 0 : index
    %2 = vector.load %arg5[%c0_2, %c0_3, %c0_4] : memref<1x18x64xf32, #tpu.memory_space<vmem>>, vector<1x1x64xf32>
    tpu.vector_store %arg5[%c0_2, %c0_3, %c0_4], %1 {strides = array<i32>} : memref<1x18x64xf32, #tpu.memory_space<vmem>>, vector<1x1x64xf32>,
    %c0_5 = arith.constant 0 : index
    %c17 = arith.constant 17 : index
    %c0_6 = arith.constant 0 : index
    %3 = vector.load %arg5[%c0_5, %c17, %c0_6] : memref<1x18x64xf32, #tpu.memory_space<vmem>>, vector<1x1x64xf32>
    tpu.vector_store %arg5[%c0_5, %c17, %c0_6], %1 {strides = array<i32>} : memref<1x18x64xf32, #tpu.memory_space<vmem>>, vector<1x1x64xf32>,
    %c0_7 = arith.constant 0 : index
    %c1 = arith.constant 1 : index
    %c0_8 = arith.constant 0 : index
    %4 = vector.load %arg5[%c0_7, %c1, %c0_8] : memref<1x18x64xf32, #tpu.memory_space<vmem>>, vector<1x16x64xf32>
    tpu.vector_store %arg5[%c0_7, %c1, %c0_8], %0 {strides = array<i32>} : memref<1x18x64xf32, #tpu.memory_space<vmem>>, vector<1x16x64xf32>,
    %cst_9 = arith.constant 0.000000e+00 : f32
    %5 = vector.broadcast %cst_9 : f32 to vector<16x64xf32>
    %c0_10 = arith.constant 0 : index
    %c0_11 = arith.constant 0 : index
    %c0_12 = arith.constant 0 : index
    %6 = vector.load %arg5[%c0_10, %c0_11, %c0_12] : memref<1x18x64xf32, #tpu.memory_space<vmem>>, vector<1x16x64xf32>
    %7 = vector.shape_cast %6 : vector<1x16x64xf32> to vector<16x64xf32>
    %c0_13 = arith.constant 0 : index
    %c0_14 = arith.constant 0 : index
    %8 = vector.load %arg2[%c0_13, %c0_14] : memref<192x64xf32, #tpu.memory_space<vmem>>, vector<64x64xf32>
    %cst_15 = arith.constant dense<0.000000e+00> : vector<16x64xf32>
    %9 = tpu.matmul %7, %8, %cst_15 {dimension_numbers = #tpu.dot_dimension_numbers<[1], [0], [0], [1], [0, 0, 1, 1], [], []>} : vector<16x64xf32>, vector<64x64xf32>, vector<16x64xf32> -> vector<16x64xf32>
    %10 = arith.addf %5, %9 : vector<16x64xf32>
    %c0_16 = arith.constant 0 : index
    %c1_17 = arith.constant 1 : index
    %c0_18 = arith.constant 0 : index
    %11 = vector.load %arg5[%c0_16, %c1_17, %c0_18] : memref<1x18x64xf32, #tpu.memory_space<vmem>>, vector<1x16x64xf32>
    %12 = vector.shape_cast %11 : vector<1x16x64xf32> to vector<16x64xf32>
    %c64 = arith.constant 64 : index
    %c0_19 = arith.constant 0 : index
    %13 = vector.load %arg2[%c64, %c0_19] : memref<192x64xf32, #tpu.memory_space<vmem>>, vector<64x64xf32>
    %cst_20 = arith.constant dense<0.000000e+00> : vector<16x64xf32>
    %14 = tpu.matmul %12, %13, %cst_20 {dimension_numbers = #tpu.dot_dimension_numbers<[1], [0], [0], [1], [0, 0, 1, 1], [], []>} : vector<16x64xf32>, vector<64x64xf32>, vector<16x64xf32> -> vector<16x64xf32>
    %15 = arith.addf %10, %14 : vector<16x64xf32>
    %c0_21 = arith.constant 0 : index
    %c2 = arith.constant 2 : index
    %c0_22 = arith.constant 0 : index
    %16 = vector.load %arg5[%c0_21, %c2, %c0_22] : memref<1x18x64xf32, #tpu.memory_space<vmem>>, vector<1x16x64xf32>
    %17 = vector.shape_cast %16 : vector<1x16x64xf32> to vector<16x64xf32>
    %c128 = arith.constant 128 : index
    %c0_23 = arith.constant 0 : index
    %18 = vector.load %arg2[%c128, %c0_23] : memref<192x64xf32, #tpu.memory_space<vmem>>, vector<64x64xf32>
    %cst_24 = arith.constant dense<0.000000e+00> : vector<16x64xf32>
    %19 = tpu.matmul %17, %18, %cst_24 {dimension_numbers = #tpu.dot_dimension_numbers<[1], [0], [0], [1], [0, 0, 1, 1], [], []>} : vector<16x64xf32>, vector<64x64xf32>, vector<16x64xf32> -> vector<16x64xf32>
    %20 = arith.addf %15, %19 : vector<16x64xf32>
    %21 = vector.shape_cast %20 : vector<16x64xf32> to vector<1x16x64xf32>
    %cst_25 = arith.constant 0.000000e+00 : f32
    %22 = vector.broadcast %cst_25 : f32 to vector<1x16x64xf32>
    %23 = arith.maximumf %21, %22 : vector<1x16x64xf32>
    %c0_26 = arith.constant 0 : index
    %c0_27 = arith.constant 0 : index
    %c0_28 = arith.constant 0 : index
    %24 = vector.load %arg6[%c0_26, %c0_27, %c0_28] : memref<1x18x64xf32, #tpu.memory_space<vmem>>, vector<1x1x64xf32>
    tpu.vector_store %arg6[%c0_26, %c0_27, %c0_28], %1 {strides = array<i32>} : memref<1x18x64xf32, #tpu.memory_space<vmem>>, vector<1x1x64xf32>,
    %c0_29 = arith.constant 0 : index
    %c17_30 = arith.constant 17 : index
    %c0_31 = arith.constant 0 : index
    %25 = vector.load %arg6[%c0_29, %c17_30, %c0_31] : memref<1x18x64xf32, #tpu.memory_space<vmem>>, vector<1x1x64xf32>
    tpu.vector_store %arg6[%c0_29, %c17_30, %c0_31], %1 {strides = array<i32>} : memref<1x18x64xf32, #tpu.memory_space<vmem>>, vector<1x1x64xf32>,
    %c0_32 = arith.constant 0 : index
    %c1_33 = arith.constant 1 : index
    %c0_34 = arith.constant 0 : index
    %26 = vector.load %arg6[%c0_32, %c1_33, %c0_34] : memref<1x18x64xf32, #tpu.memory_space<vmem>>, vector<1x16x64xf32>
    tpu.vector_store %arg6[%c0_32, %c1_33, %c0_34], %23 {strides = array<i32>} : memref<1x18x64xf32, #tpu.memory_space<vmem>>, vector<1x16x64xf32>,
    %cst_35 = arith.constant 0.000000e+00 : f32
    %27 = vector.broadcast %cst_35 : f32 to vector<16x64xf32>
    %c0_36 = arith.constant 0 : index
    %c0_37 = arith.constant 0 : index
    %c0_38 = arith.constant 0 : index
    %28 = vector.load %arg6[%c0_36, %c0_37, %c0_38] : memref<1x18x64xf32, #tpu.memory_space<vmem>>, vector<1x16x64xf32>
    %29 = vector.shape_cast %28 : vector<1x16x64xf32> to vector<16x64xf32>
    %c0_39 = arith.constant 0 : index
    %c0_40 = arith.constant 0 : index
    %30 = vector.load %arg3[%c0_39, %c0_40] : memref<192x64xf32, #tpu.memory_space<vmem>>, vector<64x64xf32>
    %cst_41 = arith.constant dense<0.000000e+00> : vector<16x64xf32>
    %31 = tpu.matmul %29, %30, %cst_41 {dimension_numbers = #tpu.dot_dimension_numbers<[1], [0], [0], [1], [0, 0, 1, 1], [], []>} : vector<16x64xf32>, vector<64x64xf32>, vector<16x64xf32> -> vector<16x64xf32>
    %32 = arith.addf %27, %31 : vector<16x64xf32>
    %c0_42 = arith.constant 0 : index
    %c1_43 = arith.constant 1 : index
    %c0_44 = arith.constant 0 : index
    %33 = vector.load %arg6[%c0_42, %c1_43, %c0_44] : memref<1x18x64xf32, #tpu.memory_space<vmem>>, vector<1x16x64xf32>
    %34 = vector.shape_cast %33 : vector<1x16x64xf32> to vector<16x64xf32>
    %c64_45 = arith.constant 64 : index
    %c0_46 = arith.constant 0 : index
    %35 = vector.load %arg3[%c64_45, %c0_46] : memref<192x64xf32, #tpu.memory_space<vmem>>, vector<64x64xf32>
    %cst_47 = arith.constant dense<0.000000e+00> : vector<16x64xf32>
    %36 = tpu.matmul %34, %35, %cst_47 {dimension_numbers = #tpu.dot_dimension_numbers<[1], [0], [0], [1], [0, 0, 1, 1], [], []>} : vector<16x64xf32>, vector<64x64xf32>, vector<16x64xf32> -> vector<16x64xf32>
    %37 = arith.addf %32, %36 : vector<16x64xf32>
    %c0_48 = arith.constant 0 : index
    %c2_49 = arith.constant 2 : index
    %c0_50 = arith.constant 0 : index
    %38 = vector.load %arg6[%c0_48, %c2_49, %c0_50] : memref<1x18x64xf32, #tpu.memory_space<vmem>>, vector<1x16x64xf32>
    %39 = vector.shape_cast %38 : vector<1x16x64xf32> to vector<16x64xf32>
    %c128_51 = arith.constant 128 : index
    %c0_52 = arith.constant 0 : index
    %40 = vector.load %arg3[%c128_51, %c0_52] : memref<192x64xf32, #tpu.memory_space<vmem>>, vector<64x64xf32>
    %cst_53 = arith.constant dense<0.000000e+00> : vector<16x64xf32>
    %41 = tpu.matmul %39, %40, %cst_53 {dimension_numbers = #tpu.dot_dimension_numbers<[1], [0], [0], [1], [0, 0, 1, 1], [], []>} : vector<16x64xf32>, vector<64x64xf32>, vector<16x64xf32> -> vector<16x64xf32>
    %42 = arith.addf %37, %41 : vector<16x64xf32>
    %43 = vector.shape_cast %42 : vector<16x64xf32> to vector<1x16x64xf32>
    %44 = arith.addf %0, %43 : vector<1x16x64xf32>
    %c0_54 = arith.constant 0 : index
    %c0_55 = arith.constant 0 : index
    %c0_56 = arith.constant 0 : index
    %45 = vector.load %arg4[%c0_54, %c0_55, %c0_56] : memref<1x16x64xf32, #tpu.memory_space<vmem>>, vector<1x16x64xf32>
    tpu.vector_store %arg4[%c0_54, %c0_55, %c0_56], %44 {strides = array<i32>} : memref<1x16x64xf32, #tpu.memory_space<vmem>>, vector<1x16x64xf32>,
    return
  }
  func.func @transform_0(%arg0: i32) -> (i32, i32, i32) {
    %c0_i32 = arith.constant 0 : i32
    %c0_i32_0 = arith.constant 0 : i32
    %c0_i32_1 = arith.constant 0 : i32
    return %arg0, %c0_i32, %c0_i32_0 : i32, i32, i32
  }
  func.func @transform_1(%arg0: i32) -> (i32, i32) {
    %c0_i32 = arith.constant 0 : i32
    %c0_i32_0 = arith.constant 0 : i32
    %c0_i32_1 = arith.constant 0 : i32
    return %c0_i32, %c0_i32_0 : i32, i32
  }
  func.func @transform_2(%arg0: i32) -> (i32, i32) {
    %c0_i32 = arith.constant 0 : i32
    %c0_i32_0 = arith.constant 0 : i32
    %c0_i32_1 = arith.constant 0 : i32
    return %c0_i32, %c0_i32_0 : i32, i32
  }
  func.func @transform_3(%arg0: i32) -> (i32, i32, i32) {
    %c0_i32 = arith.constant 0 : i32
    %c0_i32_0 = arith.constant 0 : i32
    %c0_i32_1 = arith.constant 0 : i32
    return %arg0, %c0_i32, %c0_i32_0 : i32, i32, i32
  }
}

</mosaic_0001>

<bundles_post_ra>
// kernel: residual_block_forward.1
= control target key start
LH: loop header
LB: loop body
LE: loop exit
PB: predicated region body
PF: predicated region fallthrough
CT: control target
= control target key end

     0   :  { %s561_s12 = smov 0   ;;  %s759_s0 = inlined_call_operand.vmem [shape: f32[2,16,64], index: 0, kind: input, shape index: {}]   ;;  %s760_s1 = inlined_call_operand.vmem [shape: f32[192,64], index: 1, kind: input, shape index: {}]   ;;  %s761_s2 = inlined_call_operand.vmem [shape: f32[192,64], index: 2, kind: input, shape index: {}]   ;;  %s762_s3 = inlined_call_operand.vmem [shape: f32[2,16,64], index: 3, kind: output, shape index: {}]  }
   0x1 LB: > { %s482_s13 = sadd.s32 4294967295, %s538_s12   ;;  %p486_p0 = scmp.ge.s32.totalorder %s538_s12, 1  ;;  %s538_s12 = sphi %s561_s12, %s13_s12  }
   0x2   : > { %p137_p1 = scmp.lt.s32.totalorder %s538_s12, 3 }
   0x4   : > { %p138_p2 = pnand %p486_p0, %p137_p1 }
   0x5   : > { %p161_p3 = scmp.lt.s32.totalorder (!%p138_p2), %s482_s13, 1 }
   0x6   : > { %141 = sbr.rel (%p138_p2) target bundleno = 325 (0x145), region = 32 }
   0xb   : > { %v266_v0 = vld [vmem:[%s760_s1 + $0xb8] sm:$0xff]  ;;  %v265_v1 = vld [vmem:[%s760_s1 + $0xb0] sm:$0xff]  ;;  %vm173_vm0 = vcmask 516096   ;;  %v264_v5 = vld [vmem:[%s760_s1 + $0xa8] sm:$0xff]  ;;  %s764_s13 = smov (!%p161_p3, %s482_s13), 1  ;;  %v540_v8 = vmov 0.0  }
   0xc   : > { %v198_v2 = vld [vmem:[%s760_s1 + $0x78] sm:$0xff]  ;;  %281 = vmatpush.msra.mxu2 %v266_v0  ;;  %v197_v4 = vld [vmem:[%s760_s1 + $0x70] sm:$0xff]  ;;  %v196_v7 = vld [vmem:[%s760_s1 + $0x68] sm:$0xff]  ;;  %174 = vst.msk [vmem:[#allocation2] sm:$0x1] %vm173_vm0, %v540_v8  ;;  %s505_s9 = sshll.u32 %s764_s13, 4 }
   0xd   : > { %213 = vmatpush.msra.mxu0 %v198_v2  ;;  %v188_v3 = vld [vmem:[%s760_s1 + $0x38] sm:$0xff]  ;;  %v187_v6 = vld [vmem:[%s760_s1 + $0x30] sm:$0xff]  ;;  %v186_v9 = vld [vmem:[%s760_s1 + $0x28] sm:$0xff]  ;;  %175 = vst.msk [vmem:[#allocation2 + $0x11] sm:$0x1] %vm173_vm0, %v540_v8  ;;  %vm176_vm1 = vcmask 523264   ;;  %s165_s16 = scalar_lea.vmem %s759_s0, %s505_s9  ;;  %s170_s19 = scalar_lea.vmem %s762_s3, %s505_s9 }
   0xe   : > { %242 = vmatpush.msra.mxu1 %v188_v3  ;;  %282 = vmatpush.msra.mxu2 %v265_v1  ;;  %v263_v10 = vld [vmem:[%s760_s1 + $0xa0] sm:$0xff]  ;;  %300 = vst.msk [vmem:[#allocation3] sm:$0x1] %vm173_vm0, %v540_v8  ;;  %v262_v13 = vld [vmem:[%s760_s1 + $0x98] sm:$0xff]  ;;  %v628_v17 = vld [vmem:[%s165_s16 + $0x8] sm:$0xff] }
   0xf   : > { %214 = vmatpush.msra.mxu0 %v197_v4  ;;  %v195_v11 = vld [vmem:[%s760_s1 + $0x60] sm:$0xff]  ;;  %301 = vst.msk [vmem:[#allocation3 + $0x11] sm:$0x1] %vm173_vm0, %v540_v8  ;;  %v194_v14 = vld [vmem:[%s760_s1 + $0x58] sm:$0xff]  ;;  %v261_v18 = vld [vmem:[%s760_s1 + $0x90] sm:$0xff] }
  0x10   : > { %243 = vmatpush.msra.mxu1 %v187_v6  ;;  %283 = vmatpush.msra.mxu2 %v264_v5  ;;  %v185_v12 = vld [vmem:[%s760_s1 + $0x20] sm:$0xff]  ;;  %v184_v16 = vld [vmem:[%s760_s1 + $0x18] sm:$0xff]  ;;  %v193_v19 = vld [vmem:[%s760_s1 + $0x50] sm:$0xff]  ;;  %178 = vst.msk [vmem:[#allocation2 + $0x9] sm:$0xff] %vm176_vm1, %v628_v17 }
  0x11   : > { %215 = vmatpush.msra.mxu0 %v196_v7  ;;  %v623_v15 = vld [vmem:[%s165_s16] sm:$0xff]  ;;  %v183_v20 = vld [vmem:[%s760_s1 + $0x10] sm:$0xff]  ;;  %v260_v21 = vld [vmem:[%s760_s1 + $0x88] sm:$0xff] }
  0x12   : > { %244 = vmatpush.msra.mxu1 %v186_v9  ;;  %284 = vmatpush.msra.mxu2 %v263_v10  ;;  %177 = vst.msk [vmem:[#allocation2 + $0x1] sm:$0xff] %vm176_vm1, %v623_v15  ;;  %v192_v22 = vld [vmem:[%s760_s1 + $0x48] sm:$0xff]  ;;  %v259_v24 = vld [vmem:[%s760_s1 + $0x80] sm:$0xff]  ;;  %v323_v33 = vld [vmem:[%s761_s2 + $0x78] sm:$0xff] }
  0x13   : > { %216 = vmatpush.msra.mxu0 %v195_v11  ;;  %v182_v23 = vld [vmem:[%s760_s1 + $0x8] sm:$0xff]  ;;  %v191_v25 = vld [vmem:[%s760_s1 + $0x40] sm:$0xff]  ;;  %v313_v34 = vld [vmem:[%s761_s2 + $0x38] sm:$0xff]  ;;  %338 = vmatpush.msra.mxu3 %v323_v33 }
  0x14   : > { %245 = vmatpush.msra.mxu1 %v185_v12  ;;  %285 = vmatpush.msra.mxu2 %v262_v13  ;;  %v181_v26 = vld [vmem:[%s760_s1] sm:$0xff]  ;;  %v322_v35 = vld [vmem:[%s761_s2 + $0x70] sm:$0xff]  ;;  %v321_v37 = vld [vmem:[%s761_s2 + $0x68] sm:$0xff] }
  0x15   : > { %217 = vmatpush.msra.mxu0 %v194_v14  ;;  %v312_v36 = vld [vmem:[%s761_s2 + $0x30] sm:$0xff]  ;;  %339 = vmatpush.msra.mxu3 %v322_v35  ;;  %v311_v38 = vld [vmem:[%s761_s2 + $0x28] sm:$0xff]  ;;  %v320_v39 = vld [vmem:[%s761_s2 + $0x60] sm:$0xff] }
  0x16   : > { %246 = vmatpush.msra.mxu1 %v184_v16  ;;  %286 = vmatpush.msra.mxu2 %v261_v18  ;;  %v310_v40 = vld [vmem:[%s761_s2 + $0x20] sm:$0xff]  ;;  %v319_v41 = vld [vmem:[%s761_s2 + $0x58] sm:$0xff]  ;;  %v318_v44 = vld [vmem:[%s761_s2 + $0x50] sm:$0xff] }
  0x17   : > { %218 = vmatpush.msra.mxu0 %v193_v19  ;;  %v258_v30 = vld [vmem:[#allocation2 + $0xa] sm:$0xff]  ;;  %340 = vmatpush.msra.mxu3 %v321_v37  ;;  %v309_v42 = vld [vmem:[%s761_s2 + $0x18] sm:$0xff]  ;;  %v316_v50 = vld [vmem:[%s761_s2 + $0x40] sm:$0xff] }
  0x18   : > { %247 = vmatpush.msra.mxu1 %v183_v20  ;;  %287 = vmatpush.msra.mxu2 %v260_v21  ;;  %v190_v31 = vld [vmem:[#allocation2 + $0x9] sm:$0xff]  ;;  %v391_v43 = vld [vmem:[%s761_s2 + $0xb8] sm:$0xff]  ;;  %v306_v51 = vld [vmem:[%s761_s2] sm:$0xff] }
  0x19   : > { %219 = vmatpush.msra.mxu0 %v192_v22  ;;  %v189_v27 = vld [vmem:[#allocation2 + $0x1] sm:$0xff]  ;;  %341 = vmatpush.msra.mxu3 %v320_v39  ;;  %v308_v45 = vld [vmem:[%s761_s2 + $0x10] sm:$0xff]  ;;  %v387_v53 = vld [vmem:[%s761_s2 + $0x98] sm:$0xff] }
  0x1a   : > { %248 = vmatpush.msra.mxu1 %v182_v23  ;;  %v179_v28 = vld [vmem:[#allocation2] sm:$0xff]  ;;  %288 = vmatpush.msra.mxu2 %v259_v24  ;;  %v180_v32 = vld [vmem:[#allocation2 + $0x8] sm:$0xff]  ;;  %v390_v46 = vld [vmem:[%s761_s2 + $0xb0] sm:$0xff] }
  0x1b   : > { %v257_v29 = vld [vmem:[#allocation2 + $0x2] sm:$0xff]  ;;  %220 = vmatpush.msra.mxu0 %v191_v25  ;;  %342 = vmatpush.msra.mxu3 %v319_v41  ;;  %v386_v54 = vld [vmem:[%s761_s2 + $0x90] sm:$0xff] }
  0x1c   : > { %495 = vmatmul.msk.f32.vlgmr.msra.gmra.mxu2 %vm176_vm1, %v257_v29  ;;  %249 = vmatpush.msra.mxu1 %v181_v26  ;;  %v317_v47 = vld [vmem:[%s761_s2 + $0x48] sm:$0xff]  ;;  %v388_v52 = vld [vmem:[%s761_s2 + $0xa0] sm:$0xff] }
  0x1d   : > { %491 = vmatmul.msk.f32.vlgmr.msra.gmra.mxu0 %vm176_vm1, %v189_v27  ;;  %493 = vmatmul.msk.f32.vlgmr.msra.gmra.mxu1 %vm176_vm1, %v179_v28  ;;  %v307_v48 = vld [vmem:[%s761_s2 + $0x8] sm:$0xff]  ;;  %v384_v56 = vld [vmem:[%s761_s2 + $0x80] sm:$0xff] }
  0x1e   : > { %367 = vmatpush.msrb.mxu0 %v313_v34  ;;  %507 = vmatpush.msrb.mxu2 %v313_v34  ;;  %v389_v49 = vld [vmem:[%s761_s2 + $0xa8] sm:$0xff] }
  0x1f   : > { %406 = vmatpush.msrb.mxu1 %v391_v43  ;;  %343 = vmatpush.msra.mxu3 %v318_v44  ;;  %v385_v55 = vld [vmem:[%s761_s2 + $0x88] sm:$0xff] }
  0x20   : > { %368 = vmatpush.msrb.mxu0 %v312_v36  ;;  %508 = vmatpush.msrb.mxu2 %v312_v36 }
  0x21   : > { %407 = vmatpush.msrb.mxu1 %v390_v46  ;;  %344 = vmatpush.msra.mxu3 %v317_v47 }
  0x22   : > { %369 = vmatpush.msrb.mxu0 %v311_v38  ;;  %509 = vmatpush.msrb.mxu2 %v311_v38 }
  0x23   : > { %408 = vmatpush.msrb.mxu1 %v389_v49  ;;  %345 = vmatpush.msra.mxu3 %v316_v50 }
  0x24   : > { %496 = vmatmul.msk.f32.gmra.mxu2 %vm176_vm1, %v258_v30  ;;  %370 = vmatpush.msrb.mxu0 %v310_v40 }
  0x25   : > { %492 = vmatmul.msk.f32.gmra.mxu0 %vm176_vm1, %v190_v31  ;;  %494 = vmatmul.msk.f32.gmra.mxu1 %vm176_vm1, %v180_v32 }
  0x26   : > { %510 = vmatpush.msrb.mxu2 %v310_v40  ;;  %371 = vmatpush.msrb.mxu0 %v309_v42 }
  0x27   : > { %409 = vmatpush.msrb.mxu1 %v388_v52  ;;  %515 = vmatpush.msrb.mxu3 %v391_v43 }
  0x28   : > { %511 = vmatpush.msrb.mxu2 %v309_v42  ;;  %372 = vmatpush.msrb.mxu0 %v308_v45 }
  0x29   : > { %410 = vmatpush.msrb.mxu1 %v387_v53  ;;  %516 = vmatpush.msrb.mxu3 %v390_v46 }
  0x2a   : > { %512 = vmatpush.msrb.mxu2 %v308_v45  ;;  %373 = vmatpush.msrb.mxu0 %v307_v48 }
  0x2b   : > { %411 = vmatpush.msrb.mxu1 %v386_v54  ;;  %517 = vmatpush.msrb.mxu3 %v389_v49 }
  0x2c   : > { %513 = vmatpush.msrb.mxu2 %v307_v48  ;;  %374 = vmatpush.msrb.mxu0 %v306_v51 }
  0x2d   : > { %412 = vmatpush.msrb.mxu1 %v385_v55  ;;  %518 = vmatpush.msrb.mxu3 %v388_v52 }
  0x2e   : > { %514 = vmatpush.msrb.mxu2 %v306_v51 }
  0x2f   : > { %413 = vmatpush.msrb.mxu1 %v384_v56  ;;  %519 = vmatpush.msrb.mxu3 %v387_v53 }
  0x31   : > { %520 = vmatpush.msrb.mxu3 %v386_v54 }
  0x33   : > { %521 = vmatpush.msrb.mxu3 %v385_v55 }
  0x35   : > { %522 = vmatpush.msrb.mxu3 %v384_v56 }
  0x9a   : > { %v222_v57 = vpop.f32.mrf.mxu0  ;;  %v251_v58 = vpop.f32.mrf.mxu1 }
  0x9b   : > { %v252_v59 = vadd.f32 %v251_v58, %v222_v57 }
  0x9f   : > { %v290_v60 = vpop.f32.mrf.mxu2 }
  0xa0   : > { %v296_v61 = vadd.f32 %v290_v60, %v252_v59 }
  0xa2   : > { %v298_v62 = vmax.f32 %v296_v61, 0.0  ;;  %v225_v63 = vpop.f32.mrf.mxu0  ;;  %v254_v0 = vpop.f32.mrf.mxu1 }
  0xa3   : > { %v255_v1 = vadd.f32 %v254_v0, %v225_v63 }
  0xa4   : > { %302 = vst.msk [vmem:[#allocation3 + $0x1] sm:$0xff] %vm176_vm1, %v298_v62 }
  0xa7   : > { %v293_v2 = vpop.f32.mrf.mxu2 }
  0xa8   : > { %v297_v3 = vadd.f32 %v293_v2, %v255_v1 }
  0xaa   : > { %v299_v4 = vmax.f32 %v297_v3, 0.0 }
  0xab   : > { %v314_v5 = vld [vmem:[#allocation3 + $0x1] sm:$0xff] }
  0xac   : > { %v304_v6 = vld [vmem:[#allocation3] sm:$0xff]  ;;  %303 = vst.msk [vmem:[#allocation3 + $0x9] sm:$0xff] %vm176_vm1, %v299_v4  ;;  %497 = vmatmul.msk.f32.vlgmr.msra.gmra.mxu3 %vm176_vm1, %v314_v5 }
  0xad   : > { %499 = vmatmul.msk.f32.vlgmr.msrb.gmra.mxu0 %vm176_vm1, %v304_v6 }
  0xb3   : > { %v315_v7 = vld [vmem:[#allocation3 + $0x9] sm:$0xff] }
  0xb4   : > { %v305_v8 = vld [vmem:[#allocation3 + $0x8] sm:$0xff]  ;;  %498 = vmatmul.msk.f32.gmra.mxu3 %vm176_vm1, %v315_v7 }
  0xb5   : > { %v382_v9 = vld [vmem:[#allocation3 + $0x2] sm:$0xff]  ;;  %500 = vmatmul.msk.f32.vlgmr.msrb.gmra.mxu2 %vm176_vm1, %v305_v8  ;;  %v383_v10 = vld [vmem:[#allocation3 + $0xa] sm:$0xff] }
  0xb6   : > { %501 = vmatmul.msk.f32.vlgmr.msrb.gmra.mxu1 %vm176_vm1, %v382_v9 }
  0xbc   : > { %502 = vmatmul.msk.f32.vlgmr.msrb.gmra.mxu3 %vm176_vm1, %v383_v10 }
 0x12a   : > { %v376_v11 = vpop.f32.mrf.mxu0 }
 0x12f   : > { %v347_v12 = vpop.f32.mrf.mxu3 }
 0x130   : > { %v377_v13 = vadd.f32 %v376_v11, %v347_v12 }
 0x133   : > { %v415_v14 = vpop.f32.mrf.mxu1 }
 0x134   : > { %v421_v16 = vadd.f32 %v415_v14, %v377_v13 }
 0x136   : > { %v423_v18 = vadd.f32 %v421_v16, %v623_v15 }
 0x137   : > { %v350_v19 = vpop.f32.mrf.mxu3 }
 0x138   : > { %425 = vst.msk [vmem:[%s170_s19] sm:$0xff] %vm176_vm1, %v423_v18  ;;  %v379_v20 = vpop.f32.mrf.mxu2 }
 0x139   : > { %v380_v21 = vadd.f32 %v379_v20, %v350_v19 }
 0x13f   : > { %v418_v22 = vpop.f32.mrf.mxu3 }
 0x140   : > { %v422_v23 = vadd.f32 %v418_v22, %v380_v21 }
 0x142   : > { %v424_v24 = vadd.f32 %v422_v23, %v628_v17 }
 0x144   : > { %426 = vst.msk [vmem:[%s170_s19 + $0x8] sm:$0xff] %vm176_vm1, %v424_v24 }
 0x145 PF: > { %s13_s12 = sadd.s32 1, %s538_s12  }
 0x146   : > { %p10_p4 = scmp.ge.s32.totalorder %s13_s12, 4  }
 0x148   :  { %12 = sbr.rel (!%p10_p4) target bundleno = 1 (0x1), region = 62 }

</bundles_post_ra>
